<compile_context>
chip_gen: v5e
topology: v5e:2x2
jax: 0.10.0
libtpu: 0.0.40
codegen_flags: <defaults>
</compile_context>

<pallas_src>
import jax
import jax.numpy as jnp
from jax.experimental import pallas as pl
from jax.experimental.pallas import tpu as pltpu


def _round_up(n, m):
    return ((n + m - 1) // m) * m


# ---------------------------------------------------------------------------
# Kernel
# ---------------------------------------------------------------------------
def _vae_kernel(
    x_ref, eps_ref,            # activations: [TB, Dp], [TB, Lp]   (f32)
    w1_ref, b1_ref,            # encoder L1:  [Dp, Hp], [1, Hp]    (bf16 / f32)
    w2_ref, b2_ref,            # fused head:  [Hp, 2Lp], [1, 2Lp]  (mu in [:Lp], logvar in [Lp:])
    w3_ref, b3_ref,            # decoder L1:  [Lp, Hp], [1, Hp]
    w4_ref, b4_ref,            # decoder L2:  [Hp, Dp], [1, Dp]
    xrec_ref, lat_ref,         # outputs:     [TB, Dp], [TB, 2Lp]  (f32, lane-dense)
):
    cdt = w1_ref.dtype  # MXU operand dtype (bf16 by default)

    x = x_ref[...]

    # --- encoder ---
    h = jnp.dot(x.astype(cdt), w1_ref[...],
                preferred_element_type=jnp.float32) + b1_ref[...]
    h = jnp.maximum(h, 0.0)  # ReLU (f32 VPU)

    # fused mu/logvar head: one wide matmul -> [TB, 2*Lp]
    lat = jnp.dot(h.astype(cdt), w2_ref[...],
                  preferred_element_type=jnp.float32) + b2_ref[...]
    lp = lat.shape[-1] // 2          # lane-aligned (multiple of 128) split point
    mu = lat[:, :lp]
    logvar = lat[:, lp:]

    # --- reparameterize: z = mu + eps * exp(0.5 * logvar) ---
    # padded columns: mu=0, logvar=0 -> exp=1, eps=0 -> z=0, so decoder stays exact.
    z = mu + eps_ref[...] * jnp.exp(0.5 * logvar)

    # --- decoder ---
    h2 = jnp.dot(z.astype(cdt), w3_ref[...],
                 preferred_element_type=jnp.float32) + b3_ref[...]
    h2 = jnp.maximum(h2, 0.0)
    xrec = jnp.dot(h2.astype(cdt), w4_ref[...],
                   preferred_element_type=jnp.float32) + b4_ref[...]

    xrec_ref[...] = xrec
    lat_ref[...] = lat


# ---------------------------------------------------------------------------
# Parameter preparation (one-time): zero-pad feature dims to 128, cast weights
# to the MXU compute dtype, keep biases in f32, fuse the mu/logvar head.
# ---------------------------------------------------------------------------
def prepare_padded_params(params, input_dim, latent_dim, hidden_dim,
                          compute_dtype=jnp.bfloat16):
    D, L, H = input_dim, latent_dim, hidden_dim
    Dp, Lp, Hp = _round_up(D, 128), _round_up(L, 128), _round_up(H, 128)

    def pad2(a, rows, cols):
        out = jnp.zeros((rows, cols), jnp.float32)
        return out.at[: a.shape[0], : a.shape[1]].set(a)

    w1 = pad2(params["w1"], Dp, Hp).astype(compute_dtype)
    b1 = pad2(params["b1"], 1, Hp)

    # fused encoder head: mu half -> cols [0:L], logvar half -> cols [Lp:Lp+L]
    w2 = jnp.zeros((Hp, 2 * Lp), jnp.float32)
    w2 = w2.at[:H, :L].set(params["w2"][:, :L])
    w2 = w2.at[:H, Lp:Lp + L].set(params["w2"][:, L:])
    w2 = w2.astype(compute_dtype)
    b2 = jnp.zeros((1, 2 * Lp), jnp.float32)
    b2 = b2.at[:, :L].set(params["b2"][:, :L])
    b2 = b2.at[:, Lp:Lp + L].set(params["b2"][:, L:])

    w3 = pad2(params["w3"], Lp, Hp).astype(compute_dtype)
    b3 = pad2(params["b3"], 1, Hp)
    w4 = pad2(params["w4"], Hp, Dp).astype(compute_dtype)
    b4 = pad2(params["b4"], 1, Dp)

    padded = {"w1": w1, "b1": b1, "w2": w2, "b2": b2,
              "w3": w3, "b3": b3, "w4": w4, "b4": b4}
    dims = (D, L, H, Dp, Lp, Hp)
    return padded, dims


# ---------------------------------------------------------------------------
# Wrapper
# ---------------------------------------------------------------------------
def vae_forward(x, eps, padded_params, dims, *, block_b=128):
    """x: [B, D], eps: [B, L]  ->  (x_recon [B, D], mu [B, L], logvar [B, L])"""
    D, L, H, Dp, Lp, Hp = dims
    B = x.shape[0]

    TB = min(block_b, _round_up(B, 8))       # batch tile, multiple of 8
    Bp = _round_up(B, TB)

    # zero-pad activations (batch to TB multiple, features to 128 lanes)
    x_p = jnp.zeros((Bp, Dp), jnp.float32).at[:B, :D].set(x.astype(jnp.float32))
    eps_p = jnp.zeros((Bp, Lp), jnp.float32).at[:B, :L].set(eps.astype(jnp.float32))

    p = padded_params
    weight_ops = (p["w1"], p["b1"], p["w2"], p["b2"],
                  p["w3"], p["b3"], p["w4"], p["b4"])

    grid = (Bp // TB,)

    def row_spec(cols):
        # batch-blocked activation / output spec
        return pl.BlockSpec((TB, cols), lambda i: (i, 0))

    def resident_spec(a):
        # same block index every grid step -> DMA'd once, stays resident in VMEM
        return pl.BlockSpec(a.shape, lambda i: (0, 0))

    flops = 2 * Bp * (Dp * Hp + Hp * 2 * Lp + Lp * Hp + Hp * Dp)
    bytes_accessed = (
        x_p.size * x_p.dtype.itemsize
        + eps_p.size * eps_p.dtype.itemsize
        + sum(a.size * a.dtype.itemsize for a in weight_ops)
        + (Bp * Dp + Bp * 2 * Lp) * 4
    )

    xrec_p, lat_p = pl.pallas_call(
        _vae_kernel,
        grid=grid,
        in_specs=[row_spec(Dp), row_spec(Lp)]
                 + [resident_spec(a) for a in weight_ops],
        out_specs=(row_spec(Dp), row_spec(2 * Lp)),
        out_shape=(
            jax.ShapeDtypeStruct((Bp, Dp), jnp.float32),     # x_recon (padded)
            jax.ShapeDtypeStruct((Bp, 2 * Lp), jnp.float32), # packed mu|logvar (padded)
        ),
        compiler_params=pltpu.CompilerParams(
            dimension_semantics=("parallel",),               # v7x: shard batch over 2 TCs
        ),
        cost_estimate=pl.CostEstimate(
            flops=flops,
            transcendentals=Bp * Lp,
            bytes_accessed=bytes_accessed,
        ),
    )(x_p, eps_p, *weight_ops)

    x_recon = xrec_p[:B, :D]
    mu = lat_p[:B, :L]
    logvar = lat_p[:B, Lp:Lp + L]
    return x_recon, mu, logvar


# ---------------------------------------------------------------------------
# Init (PyTorch semantics: xavier_normal_ weights, default Linear bias init).
# Weights stored as [in, out] so the kernel computes x @ W + b.
# ---------------------------------------------------------------------------
def init_vae_params(key, input_dim, latent_dim, hidden_dim):
    ks = jax.random.split(key, 8)

    def xavier(k, fan_in, fan_out):
        std = (2.0 / (fan_in + fan_out)) ** 0.5
        return (jax.random.normal(k, (fan_in, fan_out)) * std).astype(jnp.float32)

    def bias(k, fan_in, n):
        bound = 1.0 / (fan_in ** 0.5)
        return jax.random.uniform(k, (1, n), minval=-bound, maxval=bound).astype(jnp.float32)

    D, L, H = input_dim, latent_dim, hidden_dim
    return {
        "w1": xavier(ks[0], D, H),      "b1": bias(ks[1], D, H),
        "w2": xavier(ks[2], H, 2 * L),  "b2": bias(ks[3], H, 2 * L),  # unsplit fused head
        "w3": xavier(ks[4], L, H),      "b3": bias(ks[5], L, H),
        "w4": xavier(ks[6], H, D),      "b4": bias(ks[7], H, D),
    }


def vae_reference(x, eps, params, compute_dtype=jnp.bfloat16):
    """Pure-JAX reference matching the PyTorch forward semantics (same dtype policy)."""
    L = eps.shape[1]

    def dense(a, w, b):
        return jnp.dot(a.astype(compute_dtype), w.astype(compute_dtype),
                       preferred_element_type=jnp.float32) + b

    h = jnp.maximum(dense(x, params["w1"], params["b1"]), 0.0)
    lat = dense(h, params["w2"], params["b2"])
    mu, logvar = lat[:, :L], lat[:, L:]
    z = mu + eps * jnp.exp(0.5 * logvar)
    h2 = jnp.maximum(dense(z, params["w3"], params["b3"]), 0.0)
    x_recon = dense(h2, params["w4"], params["b4"])
    return x_recon, mu, logvar


if __name__ == "__main__":
    # batch, input_dim, latent_dim, hidden_dim (small test shapes)
    B, D, L, H = 64, 64, 16, 32

    key = jax.random.PRNGKey(0)
    k_params, k_x, k_eps = jax.random.split(key, 3)

    params = init_vae_params(k_params, input_dim=D, latent_dim=L, hidden_dim=H)
    x = jax.random.normal(k_x, (B, D), dtype=jnp.float32)
    # eps drawn outside the kernel for determinism (torch.randn_like equivalent)
    eps = jax.random.normal(k_eps, (B, L), dtype=jnp.float32)

    padded_params, dims = prepare_padded_params(params, D, L, H,
                                                compute_dtype=jnp.bfloat16)

    # block_b=32 -> grid of 2 batch tiles (weights stay resident across steps)
    x_recon, mu, logvar = vae_forward(x, eps, padded_params, dims, block_b=32)
    jax.block_until_ready((x_recon, mu, logvar))

    # sanity check vs pure-JAX reference (same bf16-operand / f32-accumulate policy)
    xr_ref, mu_ref, lv_ref = vae_reference(x, eps, params)
    assert jnp.allclose(x_recon, xr_ref, atol=5e-4, rtol=5e-4), "x_recon mismatch"
    assert jnp.allclose(mu, mu_ref, atol=5e-4, rtol=5e-4), "mu mismatch"
    assert jnp.allclose(logvar, lv_ref, atol=5e-4, rtol=5e-4), "logvar mismatch"

    print("KERNEL_OK")
</pallas_src>

<mosaic_0001>
module attributes {stable_mosaic.version = 11 : i64} {
  func.func @_vae_kernel(%arg0: i32, %arg1: memref<32x128xf32, #tpu.memory_space<vmem>>, %arg2: memref<32x128xf32, #tpu.memory_space<vmem>>, %arg3: memref<128x128xbf16, #tpu.memory_space<vmem>>, %arg4: memref<1x128xf32, #tpu.memory_space<vmem>>, %arg5: memref<128x256xbf16, #tpu.memory_space<vmem>>, %arg6: memref<1x256xf32, #tpu.memory_space<vmem>>, %arg7: memref<128x128xbf16, #tpu.memory_space<vmem>>, %arg8: memref<1x128xf32, #tpu.memory_space<vmem>>, %arg9: memref<128x128xbf16, #tpu.memory_space<vmem>>, %arg10: memref<1x128xf32, #tpu.memory_space<vmem>>, %arg11: memref<32x128xf32, #tpu.memory_space<vmem>>, %arg12: memref<32x256xf32, #tpu.memory_space<vmem>>) attributes {dimension_semantics = [#tpu.dimension_semantics<parallel>], iteration_bounds = array<i64: 2>, scalar_prefetch = 0 : i64, scratch_operands = 0 : i64, tpu.core_type = #tpu.core_type<tc>, window_params = [{transform_indices = @transform_0, window_bounds = array<i64: 32, 128>}, {transform_indices = @transform_1, window_bounds = array<i64: 32, 128>}, {pipeline_mode = #tpu.pipeline_mode<synchronous>, transform_indices = @transform_2, window_bounds = array<i64: 128, 128>}, {pipeline_mode = #tpu.pipeline_mode<synchronous>, transform_indices = @transform_3, window_bounds = array<i64: 1, 128>}, {pipeline_mode = #tpu.pipeline_mode<synchronous>, transform_indices = @transform_4, window_bounds = array<i64: 128, 256>}, {pipeline_mode = #tpu.pipeline_mode<synchronous>, transform_indices = @transform_5, window_bounds = array<i64: 1, 256>}, {pipeline_mode = #tpu.pipeline_mode<synchronous>, transform_indices = @transform_6, window_bounds = array<i64: 128, 128>}, {pipeline_mode = #tpu.pipeline_mode<synchronous>, transform_indices = @transform_7, window_bounds = array<i64: 1, 128>}, {pipeline_mode = #tpu.pipeline_mode<synchronous>, transform_indices = @transform_8, window_bounds = array<i64: 128, 128>}, {pipeline_mode = #tpu.pipeline_mode<synchronous>, transform_indices = @transform_9, window_bounds = array<i64: 1, 128>}, {transform_indices = @transform_10, window_bounds = array<i64: 32, 128>}, {transform_indices = @transform_11, window_bounds = array<i64: 32, 256>}]} {
    %c0 = arith.constant 0 : index
    %c0_0 = arith.constant 0 : index
    %0 = vector.load %arg1[%c0, %c0_0] : memref<32x128xf32, #tpu.memory_space<vmem>>, vector<32x128xf32>
    %1 = arith.truncf %0 : vector<32x128xf32> to vector<32x128xbf16>
    %c0_1 = arith.constant 0 : index
    %c0_2 = arith.constant 0 : index
    %2 = vector.load %arg3[%c0_1, %c0_2] : memref<128x128xbf16, #tpu.memory_space<vmem>>, vector<128x128xbf16>
    %cst = arith.constant dense<0.000000e+00> : vector<32x128xf32>
    %3 = tpu.matmul %1, %2, %cst {dimension_numbers = #tpu.dot_dimension_numbers<[1], [0], [0], [1], [0, 0, 1, 1], [], []>} : vector<32x128xbf16>, vector<128x128xbf16>, vector<32x128xf32> -> vector<32x128xf32>
    %c0_3 = arith.constant 0 : index
    %c0_4 = arith.constant 0 : index
    %4 = vector.load %arg4[%c0_3, %c0_4] : memref<1x128xf32, #tpu.memory_space<vmem>>, vector<1x128xf32>
    %5 = vector.broadcast %4 : vector<1x128xf32> to vector<32x128xf32>
    %6 = arith.addf %3, %5 : vector<32x128xf32>
    %cst_5 = arith.constant 0.000000e+00 : f32
    %7 = vector.broadcast %cst_5 : f32 to vector<32x128xf32>
    %8 = arith.maximumf %6, %7 : vector<32x128xf32>
    %9 = arith.truncf %8 : vector<32x128xf32> to vector<32x128xbf16>
    %c0_6 = arith.constant 0 : index
    %c0_7 = arith.constant 0 : index
    %10 = vector.load %arg5[%c0_6, %c0_7] : memref<128x256xbf16, #tpu.memory_space<vmem>>, vector<128x256xbf16>
    %cst_8 = arith.constant dense<0.000000e+00> : vector<32x256xf32>
    %11 = tpu.matmul %9, %10, %cst_8 {dimension_numbers = #tpu.dot_dimension_numbers<[1], [0], [0], [1], [0, 0, 1, 1], [], []>} : vector<32x128xbf16>, vector<128x256xbf16>, vector<32x256xf32> -> vector<32x256xf32>
    %c0_9 = arith.constant 0 : index
    %c0_10 = arith.constant 0 : index
    %12 = vector.load %arg6[%c0_9, %c0_10] : memref<1x256xf32, #tpu.memory_space<vmem>>, vector<1x256xf32>
    %13 = vector.broadcast %12 : vector<1x256xf32> to vector<32x256xf32>
    %14 = arith.addf %11, %13 : vector<32x256xf32>
    %15 = vector.extract_strided_slice %14 {offsets = [0, 0], sizes = [32, 128], strides = [1, 1]} : vector<32x256xf32> to vector<32x128xf32>
    %16 = vector.extract_strided_slice %14 {offsets = [0, 128], sizes = [32, 128], strides = [1, 1]} : vector<32x256xf32> to vector<32x128xf32>
    %c0_11 = arith.constant 0 : index
    %c0_12 = arith.constant 0 : index
    %17 = vector.load %arg2[%c0_11, %c0_12] : memref<32x128xf32, #tpu.memory_space<vmem>>, vector<32x128xf32>
    %cst_13 = arith.constant 5.000000e-01 : f32
    %18 = vector.broadcast %cst_13 : f32 to vector<32x128xf32>
    %19 = arith.mulf %18, %16 : vector<32x128xf32>
    %20 = math.exp %19 : vector<32x128xf32>
    %21 = arith.mulf %17, %20 : vector<32x128xf32>
    %22 = arith.addf %15, %21 : vector<32x128xf32>
    %23 = arith.truncf %22 : vector<32x128xf32> to vector<32x128xbf16>
    %c0_14 = arith.constant 0 : index
    %c0_15 = arith.constant 0 : index
    %24 = vector.load %arg7[%c0_14, %c0_15] : memref<128x128xbf16, #tpu.memory_space<vmem>>, vector<128x128xbf16>
    %cst_16 = arith.constant dense<0.000000e+00> : vector<32x128xf32>
    %25 = tpu.matmul %23, %24, %cst_16 {dimension_numbers = #tpu.dot_dimension_numbers<[1], [0], [0], [1], [0, 0, 1, 1], [], []>} : vector<32x128xbf16>, vector<128x128xbf16>, vector<32x128xf32> -> vector<32x128xf32>
    %c0_17 = arith.constant 0 : index
    %c0_18 = arith.constant 0 : index
    %26 = vector.load %arg8[%c0_17, %c0_18] : memref<1x128xf32, #tpu.memory_space<vmem>>, vector<1x128xf32>
    %27 = vector.broadcast %26 : vector<1x128xf32> to vector<32x128xf32>
    %28 = arith.addf %25, %27 : vector<32x128xf32>
    %cst_19 = arith.constant 0.000000e+00 : f32
    %29 = vector.broadcast %cst_19 : f32 to vector<32x128xf32>
    %30 = arith.maximumf %28, %29 : vector<32x128xf32>
    %31 = arith.truncf %30 : vector<32x128xf32> to vector<32x128xbf16>
    %c0_20 = arith.constant 0 : index
    %c0_21 = arith.constant 0 : index
    %32 = vector.load %arg9[%c0_20, %c0_21] : memref<128x128xbf16, #tpu.memory_space<vmem>>, vector<128x128xbf16>
    %cst_22 = arith.constant dense<0.000000e+00> : vector<32x128xf32>
    %33 = tpu.matmul %31, %32, %cst_22 {dimension_numbers = #tpu.dot_dimension_numbers<[1], [0], [0], [1], [0, 0, 1, 1], [], []>} : vector<32x128xbf16>, vector<128x128xbf16>, vector<32x128xf32> -> vector<32x128xf32>
    %c0_23 = arith.constant 0 : index
    %c0_24 = arith.constant 0 : index
    %34 = vector.load %arg10[%c0_23, %c0_24] : memref<1x128xf32, #tpu.memory_space<vmem>>, vector<1x128xf32>
    %35 = vector.broadcast %34 : vector<1x128xf32> to vector<32x128xf32>
    %36 = arith.addf %33, %35 : vector<32x128xf32>
    %c0_25 = arith.constant 0 : index
    %c0_26 = arith.constant 0 : index
    %37 = vector.load %arg11[%c0_25, %c0_26] : memref<32x128xf32, #tpu.memory_space<vmem>>, vector<32x128xf32>
    tpu.vector_store %arg11[%c0_25, %c0_26], %36 {strides = array<i32>} : memref<32x128xf32, #tpu.memory_space<vmem>>, vector<32x128xf32>,
    %c0_27 = arith.constant 0 : index
    %c0_28 = arith.constant 0 : index
    %38 = vector.load %arg12[%c0_27, %c0_28] : memref<32x256xf32, #tpu.memory_space<vmem>>, vector<32x256xf32>
    tpu.vector_store %arg12[%c0_27, %c0_28], %14 {strides = array<i32>} : memref<32x256xf32, #tpu.memory_space<vmem>>, vector<32x256xf32>,
    return
  }
  func.func @transform_0(%arg0: i32) -> (i32, i32) {
    %c0_i32 = arith.constant 0 : i32
    %c0_i32_0 = arith.constant 0 : i32
    return %arg0, %c0_i32 : i32, i32
  }
  func.func @transform_1(%arg0: i32) -> (i32, i32) {
    %c0_i32 = arith.constant 0 : i32
    %c0_i32_0 = arith.constant 0 : i32
    return %arg0, %c0_i32 : i32, i32
  }
  func.func @transform_2(%arg0: i32) -> (i32, i32) {
    %c0_i32 = arith.constant 0 : i32
    %c0_i32_0 = arith.constant 0 : i32
    %c0_i32_1 = arith.constant 0 : i32
    return %c0_i32, %c0_i32_0 : i32, i32
  }
  func.func @transform_3(%arg0: i32) -> (i32, i32) {
    %c0_i32 = arith.constant 0 : i32
    %c0_i32_0 = arith.constant 0 : i32
    %c0_i32_1 = arith.constant 0 : i32
    return %c0_i32, %c0_i32_0 : i32, i32
  }
  func.func @transform_4(%arg0: i32) -> (i32, i32) {
    %c0_i32 = arith.constant 0 : i32
    %c0_i32_0 = arith.constant 0 : i32
    %c0_i32_1 = arith.constant 0 : i32
    return %c0_i32, %c0_i32_0 : i32, i32
  }
  func.func @transform_5(%arg0: i32) -> (i32, i32) {
    %c0_i32 = arith.constant 0 : i32
    %c0_i32_0 = arith.constant 0 : i32
    %c0_i32_1 = arith.constant 0 : i32
    return %c0_i32, %c0_i32_0 : i32, i32
  }
  func.func @transform_6(%arg0: i32) -> (i32, i32) {
    %c0_i32 = arith.constant 0 : i32
    %c0_i32_0 = arith.constant 0 : i32
    %c0_i32_1 = arith.constant 0 : i32
    return %c0_i32, %c0_i32_0 : i32, i32
  }
  func.func @transform_7(%arg0: i32) -> (i32, i32) {
    %c0_i32 = arith.constant 0 : i32
    %c0_i32_0 = arith.constant 0 : i32
    %c0_i32_1 = arith.constant 0 : i32
    return %c0_i32, %c0_i32_0 : i32, i32
  }
  func.func @transform_8(%arg0: i32) -> (i32, i32) {
    %c0_i32 = arith.constant 0 : i32
    %c0_i32_0 = arith.constant 0 : i32
    %c0_i32_1 = arith.constant 0 : i32
    return %c0_i32, %c0_i32_0 : i32, i32
  }
  func.func @transform_9(%arg0: i32) -> (i32, i32) {
    %c0_i32 = arith.constant 0 : i32
    %c0_i32_0 = arith.constant 0 : i32
    %c0_i32_1 = arith.constant 0 : i32
    return %c0_i32, %c0_i32_0 : i32, i32
  }
  func.func @transform_10(%arg0: i32) -> (i32, i32) {
    %c0_i32 = arith.constant 0 : i32
    %c0_i32_0 = arith.constant 0 : i32
    return %arg0, %c0_i32 : i32, i32
  }
  func.func @transform_11(%arg0: i32) -> (i32, i32) {
    %c0_i32 = arith.constant 0 : i32
    %c0_i32_0 = arith.constant 0 : i32
    return %arg0, %c0_i32 : i32, i32
  }
}

</mosaic_0001>

<bundles_post_ra>
// kernel: tpu_custom_call.1
= control target key start
LH: loop header
LB: loop body
LE: loop exit
PB: predicated region body
PF: predicated region fallthrough
CT: control target
= control target key end

     0   :  { %s2180_s0 = inlined_call_operand.hbm [shape: f32[64,128], index: 0, kind: input, shape index: {}]   ;;  %s2181_s1 = inlined_call_operand.hbm [shape: f32[64,128], index: 1, kind: input, shape index: {}]   ;;  %s2182_s2 = inlined_call_operand.hbm [shape: bf16[128,128], index: 2, kind: input, shape index: {}]   ;;  %s2183_s3 = inlined_call_operand.vmem [shape: f32[1,128], index: 3, kind: input, shape index: {}]   ;;  %s2184_s4 = inlined_call_operand.hbm [shape: bf16[128,256], index: 4, kind: input, shape index: {}]   ;;  %s2185_s5 = inlined_call_operand.vmem [shape: f32[1,256], index: 5, kind: input, shape index: {}]   ;;  %s2186_s6 = inlined_call_operand.hbm [shape: bf16[128,128], index: 6, kind: input, shape index: {}]   ;;  %s2187_s7 = inlined_call_operand.vmem [shape: f32[1,128], index: 7, kind: input, shape index: {}]   ;;  %s2188_s8 = inlined_call_operand.hbm [shape: bf16[128,128], index: 8, kind: input, shape index: {}]   ;;  %s2189_s9 = inlined_call_operand.vmem [shape: f32[1,128], index: 9, kind: input, shape index: {}]   ;;  %s2190_s10 = inlined_call_operand.hbm [shape: f32[64,128], index: 10, kind: output, shape index: {0}]   ;;  %s2191_s11 = inlined_call_operand.hbm [shape: f32[64,256], index: 11, kind: output, shape index: {1}]  }
   0x1   :  { %2201 = sst [smem:[#allocation28_spill]] %s2180_s0 }
   0x2   :  { %2202 = sst [smem:[#allocation29_spill]] %s2182_s2 }
   0x3   :  { %2203 = sst [smem:[#allocation30_spill]] %s2184_s4 }
   0x4   :  { %2204 = sst [smem:[#allocation31_spill]] %s2186_s6 }
   0x5   :  { %2205 = sst [smem:[#allocation32_spill]] %s2188_s8 }
   0x6   :  { %17 = vsyncpa [#allocation3], 0 }
   0x7   :  { %19 = vsyncpa [#allocation3 + $0x1], 0 }
   0x8   :  { %20 = vsyncpa [#allocation6], 0 }
   0x9   :  { %22 = vsyncpa [#allocation6 + $0x1], 0 }
   0xa   :  { %23 = vsyncpa [#allocation9], 0 }
   0xb   :  { %24 = vsyncpa [#allocation12], 0 }
   0xc   :  { %25 = vsyncpa [#allocation4], 0 }
   0xd   :  { %27 = vsyncpa [#allocation4 + $0x1], 0 }
   0xe   :  { %28 = vsyncpa [#allocation15], 0 }
   0xf   :  { %30 = vsyncpa [#allocation15 + $0x1], 0  ;;  %s1921_s17 = smov 0   ;;  %s1923_s18 = smov 0  }
  0x10   :  { %s1925_s19 = smov 0   ;;  %s1927_s20 = smov 0  }
  0x11 LB: > { %2206 = sst [smem:[#allocation23_spill]] %s1835_s17  ;;  %s1942_s21 = sadd.s32 4294967295, %s1847_s20   ;;  %s1847_s20 = sphi %s1927_s20, %s2227_s20   ;;  %s1843_s19 = sphi %s1925_s19, %s2229_s19   ;;  %s1839_s18 = sphi %s1923_s18, %s2231_s18   ;;  %s1835_s17 = sphi %s1921_s17, %s2230_s17  }
  0x12   : > { %2207 = sst [smem:[#allocation24_spill]] %s1843_s19  ;;  %s1193_s22 = sadd.s32 4294967294, %s1847_s20  }
  0x13   : > { %p56_p0 = scmp.ne.s32.totalorder %s1839_s18, %s1835_s17  ;;  %p57_p1 = scmp.eq.s32.totalorder %s1942_s21, 0 }
  0x14   : > { %p274_p2 = scmp.eq.s32.totalorder %s1942_s21, 1  ;;  %p280_p3 = scmp.eq.s32.totalorder %s1193_s22, 1 }
  0x15   : > { %p1951_p4 = por %p57_p1, %p56_p0  ;;  %p1194_p5 = scmp.ge.s32.totalorder %s1847_s20, 1 }
  0x16   : > { %p1956_p6 = por %p280_p3, %p56_p0  ;;  %p313_p7 = scmp.lt.s32.totalorder %s1847_s20, 3 }
  0x17   : > { %s2211_s2 = sld [smem:[#allocation29_spill]]  ;;  %s1849_s29 = smov [#allocation7]  }
  0x18   : > { %s2209_s24 = scalar_select %p1956_p6, 1, 0 }
  0x19   : > { %p1964_p8 = pnand %p1194_p5, %p313_p7  ;;  %s326_s30 = sshll.u32 %s1849_s29, 4  ;;  %s327_s30 = int_to_ptr.vmem [resolvable:$true] %s326_s30 }
  0x1a   : > { %2210 = sst [smem:[#allocation25_spill]] %s2209_s24  ;;  %s1850_s16 = smov 64  }
  0x1b   : > { %p1461_p9 = pneg %p1964_p8  ;;  %s2214_s4 = sld [smem:[#allocation30_spill]] }
  0x1c   : > { %s1851_s22 = smov 4   ;;  %s1852_s25 = smov [#allocation8]  }
  0x1d   : > { %s324_s27 = sshll.u32 %s2211_s2, 4  ;;  %p1972_p10 = pnand %p1461_p9, %p57_p1  ;;  %s325_s27 = int_to_ptr.hbm [resolvable:$true] %s324_s27 }
  0x1e   : > { %s343_s26 = sshll.u32 %s1852_s25, 4  ;;  %s2194_s29 = smov 128   ;;  %s344_s26 = int_to_ptr.vmem [resolvable:$true] %s343_s26 }
  0x1f   : > { %1464 = dma.hbm_to_vmem [thread:$0]  (!%p1972_p10), %s325_s27, 1024, %s327_s30, [#allocation6], %s1850_s16, %s1850_s16, %s1851_s22  }
  0x20   : > { %s2196_s2 = smov 8   ;;  %s2215_s6 = sld [smem:[#allocation31_spill]] }
  0x21   : > { %s341_s15 = sshll.u32 %s2214_s4, 4  ;;  %s1855_s30 = smov [#allocation10]   ;;  %s342_s15 = int_to_ptr.hbm [resolvable:$true] %s341_s15 }
  0x22   : > { %1467 = dma.hbm_to_vmem [thread:$0]  (!%p1972_p10), %s342_s15, 2048, %s344_s26, [#allocation9], %s2194_s29, %s2194_s29, %s2196_s2  }
  0x23   : > { %s360_s25 = sshll.u32 %s1855_s30, 4  ;;  %s2216_s8 = sld [smem:[#allocation32_spill]]  ;;  %s361_s25 = int_to_ptr.vmem [resolvable:$true] %s360_s25 }
  0x24   : > { %s1856_s15 = smov [#allocation11]   ;;  %s1998_s13 = sadd.s32 1, %s1847_s20  }
  0x25   : > { %s377_s26 = sshll.u32 %s1856_s15, 4  ;;  %2217 = sst [smem:[#allocation26_spill]] %s1998_s13  ;;  %s378_s26 = int_to_ptr.vmem [resolvable:$true] %s377_s26 }
  0x26   : > { %s358_s27 = sshll.u32 %s2215_s6, 4  ;;  %s43_s14 = sadd.s32 1, %s1843_s19  ;;  %s359_s27 = int_to_ptr.hbm [resolvable:$true] %s358_s27 }
  0x27   : > { %1470 = dma.hbm_to_vmem [thread:$0]  (!%p1972_p10), %s359_s27, 1024, %s361_s25, [#allocation9], %s1850_s16, %s1850_s16, %s1851_s22  }
  0x28   : > { %s40_s30 = ssub.s32 %s1847_s20, %s1998_s13  ;;  %p50_p12 = scmp.ne.s32.totalorder %s1843_s19, %s1839_s18 }
  0x29   : > { %s375_s17 = sshll.u32 %s2216_s8, 4  ;;  %p41_p13 = scmp.eq.s32.totalorder %s40_s30, 0  ;;  %s376_s17 = int_to_ptr.hbm [resolvable:$true] %s375_s17 }
  0x2a   : > { %1473 = dma.hbm_to_vmem [thread:$0]  (!%p1972_p10), %s376_s17, 1024, %s378_s26, [#allocation12], %s1850_s16, %s1850_s16, %s1851_s22  }
  0x2b   : > { %p51_p0 = scmp.eq.s32.totalorder %s1847_s20, 0  ;;  %p2008_p3 = por %p274_p2, %p50_p12 }
  0x2c   : > { %p1492_p5 = scmp.lt.s32.totalorder %s1847_s20, 2  ;;  %s394_s27 = sand.u32 1, %s1843_s19  }
  0x2d   : > { %s2014_s24 = scalar_select %p41_p13, %s1843_s19, %s43_s14  }
  0x2e   : > { %p52_p7 = por %p51_p0, %p50_p12  ;;  %s2017_s12 = sshll.u32 %s394_s27, 5 }
  0x2f   : > { %2219 = sst [smem:[#allocation27_spill]] %s2014_s24  ;;  %s1384_s17 = sshll.u32 %s1847_s20, 5 }
  0x30   : > { %s2220_s0 = sld [smem:[#allocation28_spill]]  ;;  %s398_s15 = scalar_lea.vmem [#allocation2], %s2017_s12 }
  0x31   : > { %s406_s26 = sshll.u32 %s398_s15, 4  ;;  %p2024_p2 = pnand %p1492_p5, %p52_p7  ;;  %s407_s26 = int_to_ptr.vmem [resolvable:$true] %s406_s26 }
  0x32   : > { %s425_s6 = scalar_lea.hbm %s2181_s1, %s1384_s17  ;;  %s395_s24 = scalar_lea.sflag [#allocation3], %s394_s27 }
  0x33   : > { %s426_s8 = sshll.u32 %s425_s6, 4  ;;  %p1677_p10 = pneg %p2024_p2  ;;  %s427_s8 = int_to_ptr.hbm [resolvable:$true] %s426_s8 }
  0x36   : > { %s403_s25 = scalar_lea.hbm %s2220_s0, %s1384_s17  ;;  %s1680_s15 = scalar_lea.hbm %s2220_s0, 64 }
  0x37   : > { %s404_s30 = sshll.u32 %s403_s25, 4  ;;  %s405_s30 = int_to_ptr.hbm [resolvable:$true] %s404_s30 }
  0x38   : > { %s1673_s19 = sshra.s32 %s405_s30, 4  ;;  %s1674_s19 = int_to_ptr.hbm [resolvable:$true] %s1673_s19 }
  0x39   : > { %s1675_s16 = scalar_lea.hbm %s1674_s19, 32  ;;  %p1681_p0 = scmp.lt.s32.totalorder %s1674_s19, %s2220_s0 }
  0x3a   : > { %p1676_p9 = scmp.ne.s32.totalorder %s1674_s19, %s1675_s16  ;;  %p1682_p5 = scmp.lt.s32.totalorder %s1680_s15, %s1675_s16 }
  0x3c   : > { %p1678_p12 = pnand %p1677_p10, %p1676_p9  ;;  %p1683_p7 = por %p1682_p5, %p1681_p0 }
  0x3e   : > { %p1679_p13 = pneg %p1678_p12 }
  0x40   : > { %p1684_p11 = pnand %p1683_p7, %p1679_p13 }
  0x42   : > { %1687 = shalt.err (!%p1684_p11)
}
  0x43   : > { %s2222_s6 = smov 8   ;;  %s2223_s27 = smov 128  }
  0x44   : > { %1477 = dma.hbm_to_vmem [thread:$0]  (!%p2024_p2), %s405_s30, 512, %s407_s26, %s395_s24, %s2223_s27, %s2223_s27, %s2222_s6  }
  0x45   : > { %s420_s17 = scalar_lea.vmem [#allocation5], %s2017_s12  ;;  %s416_s25 = sand.u32 1, %s1847_s20  }
  0x46   : > { %s428_s22 = sshll.u32 %s420_s17, 4  ;;  %s417_s2 = scalar_lea.sflag [#allocation6], %s416_s25  ;;  %s429_s22 = int_to_ptr.vmem [resolvable:$true] %s428_s22 }
  0x47   : > { %s1703_s19 = sshra.s32 %s427_s8, 4  ;;  %s1710_s0 = scalar_lea.hbm %s2181_s1, 64  ;;  %s1704_s19 = int_to_ptr.hbm [resolvable:$true] %s1703_s19 }
  0x48   : > { %s1705_s16 = scalar_lea.hbm %s1704_s19, 32  ;;  %p1711_p13 = scmp.lt.s32.totalorder %s1704_s19, %s2181_s1 }
  0x49   : > { %p1706_p9 = scmp.ne.s32.totalorder %s1704_s19, %s1705_s16  ;;  %p1712_p0 = scmp.lt.s32.totalorder %s1710_s0, %s1705_s16 }
  0x4b   : > { %p1708_p11 = pnand %p1706_p9, %p1677_p10  ;;  %p1713_p5 = por %p1712_p0, %p1711_p13 }
  0x4d   : > { %p1709_p12 = pneg %p1708_p11 }
  0x4f   : > { %p1714_p7 = pnand %p1713_p5, %p1709_p12 }
  0x51   : > { %1717 = shalt.err (!%p1714_p7)
}
  0x52   : > { %1480 = dma.hbm_to_vmem [thread:$0]  (!%p2024_p2), %s427_s8, 512, %s429_s22, %s417_s2, %s2223_s27, %s2223_s27, %s2222_s6  }
  0x53   : > { %440 = sbr.rel (%p1964_p8) target bundleno = 731 (0x2db), region = 60  ;;  %s2066_s12 = sand.u32 (!%p1964_p8), 1, %s1839_s18  }
  0x54   : > { %s2069_s13 = sshll.u32 (!%p1964_p8), %s2066_s12, 5  ;;  %s443_s0 = scalar_lea.sflag (!%p1964_p8), [#allocation3], %s2066_s12 }
  0x55   : > { %s2073_s26 = scalar_lea.vmem (!%p1964_p8), [#allocation2], %s2069_s13 }
  0x58   : > { %1806 = dma.done.wait (%p1951_p4), %s443_s0, 512  }
  0x59   : > { %1808 = vsyncadd (%p1951_p4), %s443_s0, 4294966784  ;;  %s452_s8 = sand.u32 1, %s1942_s21   ;;  %s2081_s29 = scalar_lea.vmem [#allocation5], %s2069_s13 }
  0x5a   : > { %s453_s28 = scalar_lea.sflag [#allocation6], %s452_s8 }
  0x5b   : > { %1810 = dma.done.wait (%p1951_p4), %s453_s28, 512  }
  0x5c   : > { %1812 = vsyncadd (%p1951_p4), %s453_s28, 4294966784 }
  0x5d   : > { %1814 = dma.done.wait (%p57_p1), [#allocation6], 1024  }
  0x5e   : > { %1816 = vsyncadd (%p57_p1), [#allocation6], 4294966272 }
  0x5f   : > { %1818 = dma.done.wait (%p57_p1), [#allocation9], 3072  }
  0x60   : > { %1820 = vsyncadd (%p57_p1), [#allocation9], 4294964224 }
  0x61   : > { %1822 = dma.done.wait (%p57_p1), [#allocation12], 1024  }
  0x62   : > { %1824 = vsyncadd (%p57_p1), [#allocation12], 4294966272  ;;  %v1393_v0 = vld [vmem:[#allocation7 + $0x38] sm:$0xff]  ;;  %v1392_v1 = vld [vmem:[#allocation7 + $0x30] sm:$0xff]  ;;  %s1214_s17 = sshll.u32 %s2066_s12, 6  ;;  %s1428_s19 = sshll.u32 %s1942_s21, 6 }
  0x63   : > { %604 = vmatpush.bf16.msra.mxu0 %v1393_v0  ;;  %v1391_v2 = vld [vmem:[#allocation7 + $0x28] sm:$0xff]  ;;  %v1390_v3 = vld [vmem:[#allocation7 + $0x20] sm:$0xff]  ;;  %v1389_v4 = vld [vmem:[#allocation7 + $0x18] sm:$0xff]  ;;  %s2110_s22 = scalar_lea.vmem [#allocation14], %s1214_s17  ;;  %s1022_s24 = scalar_lea.hbm %s2191_s11, %s1428_s19 }
  0x64   : > { %v1388_v5 = vld [vmem:[#allocation7 + $0x10] sm:$0xff]  ;;  %v1409_v7 = vld [vmem:[#allocation8 + $0x74] sm:$0xf0]  ;;  %v1307_v10 = vld [vmem:[#allocation8 + $0x78] sm:$0xf0]  ;;  %s1023_s16 = sshll.u32 %s2110_s22, 4  ;;  %s1024_s16 = int_to_ptr.vmem [resolvable:$true] %s1023_s16 }
  0x65   : > { %v1305_v6 = vld [vmem:[#allocation8 + $0x70] sm:$0xf]  ;;  %v1408_v8 = vld [vmem:[#allocation8 + $0x74] sm:$0xf]  ;;  %v1297_v11 = vld [vmem:[#allocation8 + $0x60] sm:$0xf] }
  0x66   : > { %v1306_v9 = vor.u32 %v1409_v7, %v1305_v6  ;;  %v1407_v12 = vld [vmem:[#allocation8 + $0x64] sm:$0xf0]  ;;  %v1310_v13 = vor.u32 %v1408_v8, %v1307_v10  ;;  %v1406_v14 = vld [vmem:[#allocation8 + $0x64] sm:$0xf]  ;;  %v1299_v15 = vld [vmem:[#allocation8 + $0x68] sm:$0xf0] }
  0x67   : > { %605 = vmatpush.bf16.msra.mxu0 %v1392_v1  ;;  %v1298_v16 = vor.u32 %v1407_v12, %v1297_v11  ;;  %v1302_v17 = vor.u32 %v1406_v14, %v1299_v15  ;;  %v1289_v18 = vld [vmem:[#allocation8 + $0x50] sm:$0xf]  ;;  %v1405_v19 = vld [vmem:[#allocation8 + $0x54] sm:$0xf0]  ;;  %v1387_v20 = vld [vmem:[#allocation7 + $0x8] sm:$0xff]  ;;  %s1025_s0 = sshll.u32 %s1022_s24, 4  ;;  %s1026_s0 = int_to_ptr.hbm [resolvable:$true] %s1025_s0 }
  0x68   : > { %731 = vmatpush.bf16.msra.mxu1 %v1306_v9  ;;  %750 = vmatpush.bf16.msra.mxu2 %v1310_v13  ;;  %v1404_v21 = vld [vmem:[#allocation8 + $0x54] sm:$0xf]  ;;  %v1291_v22 = vld [vmem:[#allocation8 + $0x58] sm:$0xf0]  ;;  %v1386_v23 = vld [vmem:[#allocation7] sm:$0xff]  ;;  %v1290_v24 = vor.u32 %v1405_v19, %v1289_v18  ;;  %s1747_s8 = sshra.s32 %s1026_s0, 4  ;;  %s1748_s8 = int_to_ptr.hbm [resolvable:$true] %s1747_s8 }
  0x69   : > { %v530_v25 = vld [vmem:[%s2073_s26] sm:$0xff]  ;;  %v1294_v26 = vor.u32 %v1404_v21, %v1291_v22  ;;  %v1403_v28 = vld [vmem:[#allocation8 + $0x44] sm:$0xf0]  ;;  %v1283_v31 = vld [vmem:[#allocation8 + $0x48] sm:$0xf0]  ;;  %s1749_s28 = scalar_lea.hbm %s1748_s8, 64  ;;  %p1754_p2 = scmp.lt.s32.totalorder %s1748_s8, %s2191_s11 }
  0x6a   : > { %v1281_v27 = vld [vmem:[#allocation8 + $0x40] sm:$0xf]  ;;  %v531_v29 = vld [vmem:[%s2073_s26 + $0x8] sm:$0xff]  ;;  %v1402_v30 = vld [vmem:[#allocation8 + $0x44] sm:$0xf]  ;;  %p1750_p1 = scmp.ne.s32.totalorder %s1748_s8, %s1749_s28  ;;  %s1753_s30 = scalar_lea.hbm %s2191_s11, 128 }
  0x6b   : > { %606 = vmatpush.bf16.msra.mxu0 %v1391_v2  ;;  %v1282_v32 = vor.u32 %v1403_v28, %v1281_v27  ;;  %v534_v33 = vpack.c.bf16 %v531_v29, %v530_v25  ;;  %v1286_v34 = vor.u32 %v1402_v30, %v1283_v31  ;;  %v532_v35 = vld [vmem:[%s2073_s26 + $0x10] sm:$0xff]  ;;  %v533_v36 = vld [vmem:[%s2073_s26 + $0x18] sm:$0xff]  ;;  %v1265_v44 = vld [vmem:[#allocation8 + $0x20] sm:$0xf]  ;;  %s993_s26 = scalar_lea.sflag [#allocation15], %s2066_s12  ;;  %p1755_p10 = scmp.lt.s32.totalorder %s1753_s30, %s1749_s28 }
  0x6c   : > { %732 = vmatpush.bf16.msra.mxu1 %v1298_v16  ;;  %751 = vmatpush.bf16.msra.mxu2 %v1302_v17  ;;  %v535_v37 = vpack.c.bf16 %v533_v36, %v532_v35  ;;  %v1273_v38 = vld [vmem:[#allocation8 + $0x30] sm:$0xf]  ;;  %v1401_v39 = vld [vmem:[#allocation8 + $0x34] sm:$0xf0]  ;;  %v1400_v40 = vld [vmem:[#allocation8 + $0x34] sm:$0xf]  ;;  %p1751_p4 = pnand %p1750_p1, %p2008_p3 }
  0x6d   : > { %v1274_v41 = vor.u32 %v1401_v39, %v1273_v38  ;;  %v1275_v42 = vld [vmem:[#allocation8 + $0x38] sm:$0xf0]  ;;  %v1399_v45 = vld [vmem:[#allocation8 + $0x24] sm:$0xf0]  ;;  %v1398_v46 = vld [vmem:[#allocation8 + $0x24] sm:$0xf]  ;;  %p1756_p9 = por %p1755_p10, %p1754_p2 }
  0x6e   : > { %v1278_v43 = vor.u32 %v1400_v40, %v1275_v42  ;;  %v1266_v47 = vor.u32 %v1399_v45, %v1265_v44  ;;  %v1267_v48 = vld [vmem:[#allocation8 + $0x28] sm:$0xf0]  ;;  %v1257_v50 = vld [vmem:[#allocation8 + $0x10] sm:$0xf]  ;;  %v1397_v51 = vld [vmem:[#allocation8 + $0x14] sm:$0xf0]  ;;  %p1752_p8 = pneg %p1751_p4 }
  0x6f   : > { %607 = vmatpush.bf16.msra.mxu0 %v1390_v3  ;;  %v1270_v49 = vor.u32 %v1398_v46, %v1267_v48  ;;  %v1396_v52 = vld [vmem:[#allocation8 + $0x14] sm:$0xf]  ;;  %v1258_v53 = vor.u32 %v1397_v51, %v1257_v50  ;;  %v1259_v54 = vld [vmem:[#allocation8 + $0x18] sm:$0xf0]  ;;  %v1249_v56 = vld [vmem:[#allocation8] sm:$0xf] }
  0x70   : > { %733 = vmatpush.bf16.msra.mxu1 %v1290_v24  ;;  %752 = vmatpush.bf16.msra.mxu2 %v1294_v26  ;;  %v1262_v55 = vor.u32 %v1396_v52, %v1259_v54  ;;  %v1395_v57 = vld [vmem:[#allocation8 + $0x4] sm:$0xf0]  ;;  %v1394_v58 = vld [vmem:[#allocation8 + $0x4] sm:$0xf]  ;;  %v1251_v60 = vld [vmem:[#allocation8 + $0x8] sm:$0xf0]  ;;  %p1757_p11 = pnand %p1756_p9, %p1752_p8 }
  0x71   : > { %v1250_v59 = vor.u32 %v1395_v57, %v1249_v56  ;;  %v1254_v61 = vor.u32 %v1394_v58, %v1251_v60  ;;  %v1542_v63 = vld [vmem:[%s2183_s3] ss:$0 sm:$0xff]  ;;  %v1417_v13 = vld [vmem:[#allocation10 + $0x38] sm:$0xff]  ;;  %v1416_v14 = vld [vmem:[#allocation10 + $0x30] sm:$0xff] }
  0x72   : > { %863 = vmatpush.bf16.msra.mxu3 %v1417_v13  ;;  %v1415_v15 = vld [vmem:[#allocation10 + $0x28] sm:$0xff]  ;;  %v1414_v16 = vld [vmem:[#allocation10 + $0x20] sm:$0xff]  ;;  %v1413_v17 = vld [vmem:[#allocation10 + $0x18] sm:$0xff] }
  0x73   : > { %608 = vmatpush.bf16.msra.mxu0 %v1389_v4  ;;  %v1412_v18 = vld [vmem:[#allocation10 + $0x10] sm:$0xff]  ;;  %v1411_v19 = vld [vmem:[#allocation10 + $0x8] sm:$0xff]  ;;  %v1410_v22 = vld [vmem:[#allocation10] sm:$0xff] }
  0x74   : > { %734 = vmatpush.bf16.msra.mxu1 %v1282_v32  ;;  %753 = vmatpush.bf16.msra.mxu2 %v1286_v34  ;;  %v1424_v39 = vld [vmem:[#allocation11 + $0x30] sm:$0xff]  ;;  %v1423_v45 = vld [vmem:[#allocation11 + $0x28] sm:$0xff]  ;;  %v1422_v52 = vld [vmem:[#allocation11 + $0x20] sm:$0xff] }
  0x75   : > { %v770_v48 = vld [vmem:[%s2081_s29 + $0x8] sm:$0xff] }
  0x76   : > { %864 = vmatpush.bf16.msra.mxu3 %v1416_v14 }
  0x77   : > { %609 = vmatpush.bf16.msra.mxu0 %v1388_v5 }
  0x78   : > { %735 = vmatpush.bf16.msra.mxu1 %v1274_v41  ;;  %754 = vmatpush.bf16.msra.mxu2 %v1278_v43  ;;  %v769_v43 = vld [vmem:[%s2081_s29] sm:$0xff] }
  0x7a   : > { %865 = vmatpush.bf16.msra.mxu3 %v1415_v15 }
  0x7b   : > { %610 = vmatpush.bf16.msra.mxu0 %v1387_v20  ;;  %v645_v20 = vld [vmem:[%s2185_s5] sm:$0x3] }
  0x7c   : > { %736 = vmatpush.bf16.msra.mxu1 %v1266_v47  ;;  %755 = vmatpush.bf16.msra.mxu2 %v1270_v49  ;;  %v647_v21 = vperm.slane %v645_v20, 0  ;;  %v648_v25 = vperm.slane %v645_v20, 1 }
  0x7e   : > { %866 = vmatpush.bf16.msra.mxu3 %v1414_v16 }
  0x7f   : > { %611 = vmatpush.bf16.msra.mxu0 %v1386_v23 }
  0x80   : > { %737 = vmatpush.bf16.msra.mxu1 %v1258_v53  ;;  %756 = vmatpush.bf16.msra.mxu2 %v1262_v55 }
  0x82   : > { %612 = vmatmul.bf16.vlgmr.msra.gmra.mxu0 %v534_v33  ;;  %867 = vmatpush.bf16.msra.mxu3 %v1413_v17 }
  0x84   : > { %738 = vmatpush.bf16.msra.mxu1 %v1250_v59  ;;  %757 = vmatpush.bf16.msra.mxu2 %v1254_v61 }
  0x86   : > { %868 = vmatpush.bf16.msra.mxu3 %v1412_v18 }
  0x8a   : > { %869 = vmatpush.bf16.msra.mxu3 %v1411_v19 }
  0x8e   : > { %870 = vmatpush.bf16.msra.mxu3 %v1410_v22 }
  0x92   : > { %617 = vmatmul.bf16.gmra.mxu0 %v535_v37  ;;  %v1425_v37 = vld [vmem:[#allocation11 + $0x38] sm:$0xff] }
  0x93   : > { %956 = vmatpush.bf16.msrb.mxu0 %v1425_v37  ;;  %1429 = vmatpush.bf16.msrb.mxu1 %v1425_v37 }
  0x97   : > { %957 = vmatpush.bf16.msrb.mxu0 %v1424_v39  ;;  %1430 = vmatpush.bf16.msrb.mxu1 %v1424_v39 }
  0x9b   : > { %958 = vmatpush.bf16.msrb.mxu0 %v1423_v45  ;;  %1431 = vmatpush.bf16.msrb.mxu1 %v1423_v45 }
  0x9f   : > { %959 = vmatpush.bf16.msrb.mxu0 %v1422_v52  ;;  %1432 = vmatpush.bf16.msrb.mxu1 %v1422_v52 }
  0xff   : > { %v613_v62 = vpop.f32.mrf.mxu0 }
 0x100   : > { %v614_v0 = vadd.f32 %v1542_v63, %v613_v62  ;;  %v771_v62 = vld [vmem:[%s2081_s29 + $0x10] sm:$0xff] }
 0x102   : > { %v623_v3 = vmax.f32 %v614_v0, 0.0 }
 0x107   : > { %v615_v1 = vpop.f32.mrf.mxu0 }
 0x108   : > { %v616_v2 = vadd.f32 %v1542_v63, %v615_v1 }
 0x10a   : > { %v624_v4 = vmax.f32 %v616_v2, 0.0 }
 0x10c   : > { %v627_v5 = vpack.c.bf16 %v624_v4, %v623_v3 }
 0x10e   : > { %739 = vmatmul.bf16.vlgmr.msra.gmra.mxu1 %v627_v5  ;;  %758 = vmatmul.bf16.vlgmr.msra.gmra.mxu2 %v627_v5 }
 0x10f   : > { %v618_v6 = vpop.f32.mrf.mxu0 }
 0x110   : > { %v619_v7 = vadd.f32 %v1542_v63, %v618_v6  ;;  %v1421_v6 = vld [vmem:[#allocation11 + $0x18] sm:$0xff] }
 0x111   : > { %960 = vmatpush.bf16.msrb.mxu0 %v1421_v6  ;;  %1433 = vmatpush.bf16.msrb.mxu1 %v1421_v6 }
 0x112   : > { %v625_v10 = vmax.f32 %v619_v7, 0.0  ;;  %v1420_v7 = vld [vmem:[#allocation11 + $0x10] sm:$0xff] }
 0x115   : > { %961 = vmatpush.bf16.msrb.mxu0 %v1420_v7  ;;  %1434 = vmatpush.bf16.msrb.mxu1 %v1420_v7 }
 0x117   : > { %v620_v8 = vpop.f32.mrf.mxu0 }
 0x118   : > { %v621_v9 = vadd.f32 %v1542_v63, %v620_v8  ;;  %v772_v63 = vld [vmem:[%s2081_s29 + $0x18] sm:$0xff]  ;;  %v1419_v8 = vld [vmem:[#allocation11 + $0x8] sm:$0xff] }
 0x119   : > { %962 = vmatpush.bf16.msrb.mxu0 %v1419_v8  ;;  %1435 = vmatpush.bf16.msrb.mxu1 %v1419_v8 }
 0x11a   : > { %v626_v11 = vmax.f32 %v621_v9, 0.0  ;;  %v1418_v9 = vld [vmem:[#allocation11] sm:$0xff] }
 0x11c   : > { %v628_v12 = vpack.c.bf16 %v626_v11, %v625_v10  ;;  %v1543_v11 = vld [vmem:[%s2187_s7] ss:$0 sm:$0xff] }
 0x11d   : > { %963 = vmatpush.bf16.msrb.mxu0 %v1418_v9  ;;  %1436 = vmatpush.bf16.msrb.mxu1 %v1418_v9 }
 0x11e   : > { %744 = vmatmul.bf16.gmra.mxu1 %v628_v12  ;;  %763 = vmatmul.bf16.gmra.mxu2 %v628_v12 }
 0x18b   : > { %v740_v23 = vpop.f32.mrf.mxu1 }
 0x18c   : > { %v741_v24 = vadd.f32 %v740_v23, %v647_v21 }
 0x18e   : > { %979 = vst [vmem:[%s2110_s22] sm:$0xff] %v741_v24 }
 0x191   : > { %v759_v26 = vpop.f32.mrf.mxu2 }
 0x192   : > { %v760_v27 = vadd.f32 %v759_v26, %v648_v25 }
 0x193   : > { %v742_v28 = vpop.f32.mrf.mxu1 }
 0x194   : > { %v773_v29 = vmul.f32 0.5, %v760_v27  ;;  %980 = vst [vmem:[%s2110_s22 + $0x8] sm:$0xff] %v760_v27  ;;  %v743_v30 = vadd.f32 %v742_v28, %v647_v21 }
 0x196   : > { %981 = vst [vmem:[%s2110_s22 + $0x10] sm:$0xff] %v743_v30  ;;  %v777_v31 = vmul.f32 1.442695, %v773_v29 }
 0x198   : > { %1545 = vpow2.f32 %v777_v31 }
 0x199   : > { %v761_v32 = vpop.f32.mrf.mxu2 }
 0x19a   : > { %v762_v33 = vadd.f32 %v761_v32, %v648_v25 }
 0x19b   : > { %v745_v34 = vpop.f32.mrf.mxu1 }
 0x19c   : > { %v774_v35 = vmul.f32 0.5, %v762_v33  ;;  %982 = vst [vmem:[%s2110_s22 + $0x18] sm:$0xff] %v762_v33  ;;  %v746_v36 = vadd.f32 %v745_v34, %v647_v21 }
 0x19e   : > { %v779_v38 = vmul.f32 1.442695, %v774_v35  ;;  %983 = vst [vmem:[%s2110_s22 + $0x20] sm:$0xff] %v746_v36  ;;  %v1546_v41 = vpop.eup %1545 }
 0x19f   : > { %v785_v49 = vmul.f32 %v1546_v41, %v769_v43 }
 0x1a0   : > { %1547 = vpow2.f32 %v779_v38 }
 0x1a1   : > { %v764_v40 = vpop.f32.mrf.mxu2  ;;  %v789_v55 = vadd.f32 %v785_v49, %v741_v24 }
 0x1a2   : > { %v765_v42 = vadd.f32 %v764_v40, %v648_v25 }
 0x1a3   : > { %v747_v44 = vpop.f32.mrf.mxu1 }
 0x1a4   : > { %v775_v46 = vmul.f32 0.5, %v765_v42  ;;  %984 = vst [vmem:[%s2110_s22 + $0x28] sm:$0xff] %v765_v42  ;;  %v748_v47 = vadd.f32 %v747_v44, %v647_v21 }
 0x1a6   : > { %v1548_v50 = vpop.eup %1547  ;;  %985 = vst [vmem:[%s2110_s22 + $0x30] sm:$0xff] %v748_v47  ;;  %v781_v53 = vmul.f32 1.442695, %v775_v46 }
 0x1a7   : > { %v786_v51 = vmul.f32 %v1548_v50, %v770_v48 }
 0x1a8   : > { %1549 = vpow2.f32 %v781_v53 }
 0x1a9   : > { %v766_v54 = vpop.f32.mrf.mxu2  ;;  %v790_v56 = vadd.f32 %v786_v51, %v743_v30 }
 0x1aa   : > { %v767_v57 = vadd.f32 %v766_v54, %v648_v25 }
 0x1ab   : > { %v793_v58 = vpack.c.bf16 %v790_v56, %v789_v55 }
 0x1ac   : > { %v776_v59 = vmul.f32 0.5, %v767_v57  ;;  %986 = vst [vmem:[%s2110_s22 + $0x38] sm:$0xff] %v767_v57 }
 0x1ad   : > { %871 = vmatmul.bf16.vlgmr.msra.gmra.mxu3 %v793_v58 }
 0x1ae   : > { %v783_v60 = vmul.f32 1.442695, %v776_v59  ;;  %v1550_v61 = vpop.eup %1549 }
 0x1af   : > { %v787_v0 = vmul.f32 %v1550_v61, %v771_v62 }
 0x1b0   : > { %1551 = vpow2.f32 %v783_v60 }
 0x1b1   : > { %v791_v3 = vadd.f32 %v787_v0, %v746_v36 }
 0x1b6   : > { %v1552_v1 = vpop.eup %1551 }
 0x1b7   : > { %v788_v2 = vmul.f32 %v1552_v1, %v772_v63 }
 0x1b9   : > { %v792_v4 = vadd.f32 %v788_v2, %v748_v47 }
 0x1bb   : > { %v794_v5 = vpack.c.bf16 %v792_v4, %v791_v3 }
 0x1bd   : > { %876 = vmatmul.bf16.gmra.mxu3 %v794_v5 }
 0x230   : > { %v872_v10 = vpop.f32.mrf.mxu3 }
 0x231   : > { %v873_v12 = vadd.f32 %v1543_v11, %v872_v10 }
 0x233   : > { %v882_v15 = vmax.f32 %v873_v12, 0.0 }
 0x238   : > { %v874_v13 = vpop.f32.mrf.mxu3 }
 0x239   : > { %v875_v14 = vadd.f32 %v1543_v11, %v874_v13 }
 0x23b   : > { %v883_v16 = vmax.f32 %v875_v14, 0.0 }
 0x23d   : > { %v886_v17 = vpack.c.bf16 %v883_v16, %v882_v15 }
 0x23f   : > { %964 = vmatmul.bf16.vlgmr.msrb.gmra.mxu0 %v886_v17 }
 0x240   : > { %v877_v18 = vpop.f32.mrf.mxu3 }
 0x241   : > { %v878_v19 = vadd.f32 %v1543_v11, %v877_v18 }
 0x243   : > { %v884_v22 = vmax.f32 %v878_v19, 0.0 }
 0x248   : > { %v879_v20 = vpop.f32.mrf.mxu3 }
 0x249   : > { %v880_v21 = vadd.f32 %v1543_v11, %v879_v20 }
 0x24b   : > { %v885_v23 = vmax.f32 %v880_v21, 0.0 }
 0x24d   : > { %v887_v24 = vpack.c.bf16 %v885_v23, %v884_v22 }
 0x24f   : > { %969 = vmatmul.bf16.vlgmr.msrb.gmra.mxu1 %v887_v24 }
 0x250   : > { %1760 = shalt.err (!%p1757_p11)
}
 0x251   : > { %s1857_s17 = smov 256   ;;  %s1858_s22 = smov 16   ;;  %v1544_v25 = vld [vmem:[%s2189_s9] ss:$0 sm:$0xff] }
 0x252   : > { %1458 = dma.vmem_to_hbm [thread:$0]  (%p2008_p3), %s1024_s16, 1024, %s1026_s0, %s993_s26, %s1857_s17, %s1857_s17, %s1858_s22  }
 0x253   : > { %s518_s19 = scalar_lea.vmem [#allocation13], %s2069_s13  ;;  %s1426_s15 = sshll.u32 %s1942_s21, 5 }
 0x254   : > { %s1004_s16 = scalar_lea.hbm %s2190_s10, %s1426_s15  ;;  %s1005_s0 = sshll.u32 %s518_s19, 4  ;;  %s1006_s0 = int_to_ptr.vmem [resolvable:$true] %s1005_s0 }
 0x255   : > { %s1007_s26 = sshll.u32 %s1004_s16, 4  ;;  %s988_s13 = scalar_lea.sflag [#allocation4], %s2066_s12  ;;  %s1008_s26 = int_to_ptr.hbm [resolvable:$true] %s1007_s26 }
 0x256   : > { %s1775_s8 = sshra.s32 %s1008_s26, 4  ;;  %s1781_s23 = scalar_lea.hbm %s2190_s10, 64  ;;  %s1776_s8 = int_to_ptr.hbm [resolvable:$true] %s1775_s8 }
 0x257   : > { %s1777_s28 = scalar_lea.hbm %s1776_s8, 32  ;;  %p1782_p5 = scmp.lt.s32.totalorder %s1776_s8, %s2190_s10 }
 0x258   : > { %p1778_p12 = scmp.ne.s32.totalorder %s1776_s8, %s1777_s28  ;;  %p1783_p7 = scmp.lt.s32.totalorder %s1781_s23, %s1777_s28 }
 0x25a   : > { %p1779_p13 = pnand %p1778_p12, %p2008_p3  ;;  %p1784_p1 = por %p1783_p7, %p1782_p5 }
 0x25c   : > { %p1780_p0 = pneg %p1779_p13 }
 0x25e   : > { %p1785_p4 = pnand %p1784_p1, %p1780_p0 }
 0x2bc   : > { %v965_v26 = vpop.f32.mrf.mxu0 }
 0x2bd   : > { %v966_v27 = vadd.f32 %v1544_v25, %v965_v26 }
 0x2bf   : > { %975 = vst [vmem:[%s518_s19] sm:$0xff] %v966_v27 }
 0x2c4   : > { %v967_v28 = vpop.f32.mrf.mxu0 }
 0x2c5   : > { %v968_v29 = vadd.f32 %v1544_v25, %v967_v28 }
 0x2c7   : > { %976 = vst [vmem:[%s518_s19 + $0x8] sm:$0xff] %v968_v29 }
 0x2cc   : > { %v970_v30 = vpop.f32.mrf.mxu1 }
 0x2cd   : > { %v971_v31 = vadd.f32 %v1544_v25, %v970_v30 }
 0x2cf   : > { %977 = vst [vmem:[%s518_s19 + $0x10] sm:$0xff] %v971_v31 }
 0x2d4   : > { %v972_v32 = vpop.f32.mrf.mxu1 }
 0x2d5   : > { %v973_v33 = vadd.f32 %v1544_v25, %v972_v32 }
 0x2d7   : > { %978 = vst [vmem:[%s518_s19 + $0x18] sm:$0xff] %v973_v33 }
 0x2d8   : > { %1788 = shalt.err (!%p1785_p4)
}
 0x2d9   : > { %s1859_s12 = smov 128   ;;  %s1860_s27 = smov 8  }
 0x2da   : > { %1457 = dma.vmem_to_hbm [thread:$0]  (%p2008_p3), %s1006_s0, 512, %s1008_s26, %s988_s13, %s1859_s12, %s1859_s12, %s1860_s27  }
 0x2db PF: > { %s2224_s17 = sld [smem:[#allocation23_spill]]  ;;  %p2226_p8 = scmp.ge.s32.totalorder %s1847_s20, 2 }
 0x2dd   : > { %p1482_p2 = pnand %p2226_p8, %p1956_p6 }
 0x2df   : > { %p1483_p10 = pneg %p1482_p2 }
 0x2e1   : > { %s1040_s25 = sand.u32 1, %s2224_s17  }
 0x2e2   : > { %s1041_s2 = scalar_lea.sflag [#allocation4], %s1040_s25 }
 0x2e3   : > { %1826 = dma.done.wait (%p1483_p10), %s1041_s2, 512  }
 0x2e4   : > { %1828 = vsyncadd (%p1483_p10), %s1041_s2, 4294966784  ;;  %s1051_s19 = scalar_lea.sflag [#allocation15], %s1040_s25 }
 0x2e5   : > { %1830 = dma.done.wait (%p1483_p10), %s1051_s19, 1024  }
 0x2e6   : > { %1832 = vsyncadd (%p1483_p10), %s1051_s19, 4294966272  ;;  %s2227_s20 = sld [smem:[#allocation26_spill]]  ;;  %s2230_s17 = smov %s1839_s18 }
 0x2e7   : > { %s2228_s15 = sld [smem:[#allocation24_spill]] }
 0x2e8   : > { %s2229_s19 = sld [smem:[#allocation27_spill]] }
 0x2ec   : > { %p33_p3 = scmp.ge.s32.totalorder %s2227_s20, 4  }
 0x2ed   : > { %s2231_s18 = smov %s2228_s15 }
 0x2ee   :  { %35 = sbr.rel (!%p33_p3) target bundleno = 17 (0x11), region = 151 }
 0x2f3   :  { %1057 = vsyncpa [#allocation3], 1 }
 0x2f4   :  { %1059 = vsyncpa [#allocation3 + $0x1], 1 }
 0x2f5   :  { %1060 = vsyncpa [#allocation6], 1 }
 0x2f6   :  { %1062 = vsyncpa [#allocation6 + $0x1], 1 }
 0x2f7   :  { %1063 = vsyncpa [#allocation9], 1 }
 0x2f8   :  { %1064 = vsyncpa [#allocation12], 1 }
 0x2f9   :  { %1065 = vsyncpa [#allocation4], 1 }
 0x2fa   :  { %1067 = vsyncpa [#allocation4 + $0x1], 1 }
 0x2fb   :  { %1068 = vsyncpa [#allocation15], 1 }
 0x2fc   :  { %1070 = vsyncpa [#allocation15 + $0x1], 1 }

</bundles_post_ra>
